<compile_context>
chip_gen: v5e
topology: v5e:2x2
jax: 0.10.0
libtpu: 0.0.40
codegen_flags: <defaults>
</compile_context>

<pallas_src>
import functools

import jax
import jax.numpy as jnp
from jax import lax
from jax.experimental import pallas as pl
from jax.experimental.pallas import tpu as pltpu


_LANE = 128        # lane width: last dim of every VMEM block
_SUBLANE = 16      # safe sublane multiple for bf16 tiles
_NEG_BIG = -1e30   # Python float: folded into the trace, never a captured array


def _round_up(x, m):
    return (x + m - 1) // m * m


def _pad2(a, rows, cols):
    return jnp.pad(a, ((0, rows - a.shape[0]), (0, cols - a.shape[1])))


def _graphconv_kernel(ahat_ref, x_ref, w_ref, b_ref, out_ref, acc_ref, *,
                      xw_first, apply_relu, apply_log_softmax, valid_out):
    """One (i, k) grid step of  out = Ahat @ X @ W + b  (+ activation).

    grid = (n_dst tiles [parallel], n_src tiles [reduction]).
    acc_ref: f32 VMEM accumulator, (tm, F_out_p) if xw_first else (tm, F_in_p).
    """
    k = pl.program_id(1)
    nk = pl.num_programs(1)

    @pl.when(k == 0)
    def _():
        acc_ref[...] = jnp.zeros_like(acc_ref)

    if xw_first:
        # narrowing layer: (tk, Fi) @ (Fi, Fo) first, then the big matmul at
        # the reduced width Fo.
        xw = jnp.dot(x_ref[...], w_ref[...], preferred_element_type=jnp.float32)
        acc_ref[...] += jnp.dot(ahat_ref[...], xw.astype(jnp.bfloat16),
                                preferred_element_type=jnp.float32)
    else:
        # widening layer: aggregate first at width Fi.
        acc_ref[...] += jnp.dot(ahat_ref[...], x_ref[...],
                                preferred_element_type=jnp.float32)

    @pl.when(k == nk - 1)
    def _():
        if xw_first:
            z = acc_ref[...] + b_ref[...]
        else:
            z = jnp.dot(acc_ref[...].astype(jnp.bfloat16), w_ref[...],
                        preferred_element_type=jnp.float32) + b_ref[...]
        if apply_relu:
            z = jnp.maximum(z, 0.0)
        if apply_log_softmax:
            # mask lane-padding so padded logits don't pollute the normalizer
            col = lax.broadcasted_iota(jnp.int32, z.shape, 1)
            z = jnp.where(col < valid_out, z, _NEG_BIG)
            m = jnp.max(z, axis=-1, keepdims=True)
            lse = m + jnp.log(jnp.sum(jnp.exp(z - m), axis=-1, keepdims=True))
            z = z - lse
        out_ref[...] = z.astype(out_ref.dtype)


def graphconv(ahat, x, w, b, *, apply_relu=False, apply_log_softmax=False,
              tm=256, tk=512):
    """out[:n_dst] = activation(Ahat @ x @ w + b), via one fused pallas_call."""
    n_dst, n_src = ahat.shape
    in_f = x.shape[1]
    out_f = w.shape[1]

    # lane/sublane padding & tile sizing (tiles sized well under the 32 MiB
    # scoped-VMEM default so they also fit v7x's 64 MiB physical VMEM with
    # double-buffering headroom)
    fi_p = _round_up(in_f, _LANE)
    fo_p = _round_up(out_f, _LANE)
    tm = min(tm, _round_up(n_dst, _SUBLANE))
    tk = min(tk, _round_up(n_src, _LANE))
    n_dst_p = _round_up(n_dst, tm)
    n_src_p = _round_up(n_src, tk)

    # bf16 MXU inputs, f32 bias / accumulator / epilogue
    ahat_p = _pad2(ahat, n_dst_p, n_src_p).astype(jnp.bfloat16)
    x_p = _pad2(x, n_src_p, fi_p).astype(jnp.bfloat16)
    w_p = _pad2(w, fi_p, fo_p).astype(jnp.bfloat16)
    b_p = jnp.pad(b, (0, fo_p - out_f)).reshape(1, fo_p).astype(jnp.float32)

    xw_first = out_f < in_f            # cheaper association on narrowing layers
    acc_f = fo_p if xw_first else fi_p

    kernel = functools.partial(
        _graphconv_kernel,
        xw_first=xw_first,
        apply_relu=apply_relu,
        apply_log_softmax=apply_log_softmax,
        valid_out=out_f,
    )

    out_p = pl.pallas_call(
        kernel,
        out_shape=jax.ShapeDtypeStruct((n_dst_p, fo_p), jnp.float32),
        grid_spec=pltpu.PrefetchScalarGridSpec(
            num_scalar_prefetch=0,
            grid=(n_dst_p // tm, n_src_p // tk),
            in_specs=[
                pl.BlockSpec((tm, tk), lambda i, k: (i, k)),      # Ahat tile
                pl.BlockSpec((tk, fi_p), lambda i, k: (k, 0)),    # h_src tile
                pl.BlockSpec((fi_p, fo_p), lambda i, k: (0, 0)),  # W (resident)
                pl.BlockSpec((1, fo_p), lambda i, k: (0, 0)),     # bias
            ],
            out_specs=pl.BlockSpec((tm, fo_p), lambda i, k: (i, 0)),
            scratch_shapes=[pltpu.VMEM((tm, acc_f), jnp.float32)],
        ),
        compiler_params=pltpu.CompilerParams(
            dimension_semantics=("parallel", "arbitrary")),
    )(ahat_p, x_p, w_p, b_p)

    return out_p[:n_dst, :out_f]


def gcn_forward(block_ahats, x, params):
    """Mirrors GCN.forward: GraphConv(+relu) per block, log_softmax at the end.

    (dropout in the original __init__ is never used in forward; h[:num_dst]
    slicing is implicit in the dst x src shape of Ahat.)
    """
    # TODO(synk): fuse consecutive layers into a single pallas_call keeping h
    # in VMEM scratch to avoid the per-layer HBM round-trip.
    h = x
    n_layers = len(params)
    for l, (ahat, (w, b)) in enumerate(zip(block_ahats, params)):
        is_last = (l == n_layers - 1)
        h = graphconv(ahat, h, w, b,
                      apply_relu=not is_last,
                      apply_log_softmax=is_last)
    return h


def gcn_reference(block_ahats, x, params):
    """Pure-JAX f32 reference of the same forward pass (for a sanity check)."""
    h = x
    n_layers = len(params)
    for l, (ahat, (w, b)) in enumerate(zip(block_ahats, params)):
        h = ahat @ h @ w + b
        if l < n_layers - 1:
            h = jnp.maximum(h, 0.0)
    return jax.nn.log_softmax(h, axis=-1)


def normalize_adj(adj):
    """DGL GraphConv norm='both': D_dst^-1/2 A D_src^-1/2, degrees clamped >= 1."""
    out_deg = jnp.maximum(adj.sum(axis=0), 1.0)   # per-src out-degree
    in_deg = jnp.maximum(adj.sum(axis=1), 1.0)    # per-dst in-degree
    return adj * (in_deg[:, None] ** -0.5) * (out_deg[None, :] ** -0.5)


def glorot(key, shape):
    fan_in, fan_out = shape
    limit = (6.0 / (fan_in + fan_out)) ** 0.5
    return jax.random.uniform(key, shape, jnp.float32, -limit, limit)


if __name__ == "__main__":
    key = jax.random.PRNGKey(0)

    # Small synthetic sampled-block GCN: 2 layers.
    in_feats, n_hidden, n_classes = 16, 32, 8
    n0, n1, n2 = 64, 32, 16   # src nodes per block; dst nodes of block l = src of block l+1

    k_feat, k_a0, k_a1, k_w0, k_w1 = jax.random.split(key, 5)

    # Input node features for block-0 source nodes.
    x = jax.random.normal(k_feat, (n0, in_feats), jnp.float32)

    # Dense block adjacencies (dst x src), with self-loops (dst i == src i).
    a0 = (jax.random.uniform(k_a0, (n1, n0)) < 0.2).astype(jnp.float32)
    a0 = jnp.maximum(a0, jnp.eye(n1, n0, dtype=jnp.float32))
    a1 = (jax.random.uniform(k_a1, (n2, n1)) < 0.3).astype(jnp.float32)
    a1 = jnp.maximum(a1, jnp.eye(n2, n1, dtype=jnp.float32))

    ahat0 = normalize_adj(a0)
    ahat1 = normalize_adj(a1)

    # GraphConv params: xavier-uniform weight, zero bias (deterministic).
    params = [
        (glorot(k_w0, (in_feats, n_hidden)), jnp.zeros((n_hidden,), jnp.float32)),
        (glorot(k_w1, (n_hidden, n_classes)), jnp.zeros((n_classes,), jnp.float32)),
    ]

    out = gcn_forward([ahat0, ahat1], x, params)
    jax.block_until_ready(out)
    assert out.shape == (n2, n_classes)

    ref = gcn_reference([ahat0, ahat1], x, params)
    assert bool(jnp.all(jnp.isfinite(out)))
    # generous tolerance: MXU inputs are bf16, reference is f32
    assert bool(jnp.allclose(out, ref, atol=0.25, rtol=0.25)), "mismatch vs reference"

    print("KERNEL_OK")
</pallas_src>

<mosaic_0001>
module attributes {stable_mosaic.version = 11 : i64} {
  func.func @_graphconv_kernel(%arg0: i32, %arg1: i32, %arg2: memref<32x128xbf16, #tpu.memory_space<vmem>>, %arg3: memref<128x128xbf16, #tpu.memory_space<vmem>>, %arg4: memref<128x128xbf16, #tpu.memory_space<vmem>>, %arg5: memref<1x128xf32, #tpu.memory_space<vmem>>, %arg6: memref<32x128xf32, #tpu.memory_space<vmem>>, %arg7: memref<32x128xf32, #tpu.memory_space<vmem>>) attributes {dimension_semantics = [#tpu.dimension_semantics<parallel>, #tpu.dimension_semantics<arbitrary>], iteration_bounds = array<i64: 1, 1>, scalar_prefetch = 0 : i64, scratch_operands = 1 : i64, tpu.core_type = #tpu.core_type<tc>, window_params = [{transform_indices = @transform_0, window_bounds = array<i64: 32, 128>}, {transform_indices = @transform_1, window_bounds = array<i64: 128, 128>}, {pipeline_mode = #tpu.pipeline_mode<synchronous>, transform_indices = @transform_2, window_bounds = array<i64: 128, 128>}, {pipeline_mode = #tpu.pipeline_mode<synchronous>, transform_indices = @transform_3, window_bounds = array<i64: 1, 128>}, {transform_indices = @transform_4, window_bounds = array<i64: 32, 128>}]} {
    %c0_i32 = arith.constant 0 : i32
    %0 = arith.cmpi eq, %arg1, %c0_i32 : i32
    %1 = arith.extui %0 : i1 to i32
    %c0_i32_0 = arith.constant 0 : i32
    %2 = arith.cmpi ne, %1, %c0_i32_0 : i32
    scf.if %2 {
      %cst_10 = arith.constant 0.000000e+00 : f32
      %12 = vector.broadcast %cst_10 : f32 to vector<32x128xf32>
      %c0_11 = arith.constant 0 : index
      %c0_12 = arith.constant 0 : index
      %13 = vector.load %arg7[%c0_11, %c0_12] : memref<32x128xf32, #tpu.memory_space<vmem>>, vector<32x128xf32>
      tpu.vector_store %arg7[%c0_11, %c0_12], %12 {strides = array<i32>} : memref<32x128xf32, #tpu.memory_space<vmem>>, vector<32x128xf32>,
    } else {
    }
    %c0 = arith.constant 0 : index
    %c0_1 = arith.constant 0 : index
    %3 = vector.load %arg7[%c0, %c0_1] : memref<32x128xf32, #tpu.memory_space<vmem>>, vector<32x128xf32>
    %c0_2 = arith.constant 0 : index
    %c0_3 = arith.constant 0 : index
    %4 = vector.load %arg2[%c0_2, %c0_3] : memref<32x128xbf16, #tpu.memory_space<vmem>>, vector<32x128xbf16>
    %c0_4 = arith.constant 0 : index
    %c0_5 = arith.constant 0 : index
    %5 = vector.load %arg3[%c0_4, %c0_5] : memref<128x128xbf16, #tpu.memory_space<vmem>>, vector<128x128xbf16>
    %cst = arith.constant dense<0.000000e+00> : vector<32x128xf32>
    %6 = tpu.matmul %4, %5, %cst {dimension_numbers = #tpu.dot_dimension_numbers<[1], [0], [0], [1], [0, 0, 1, 1], [], []>} : vector<32x128xbf16>, vector<128x128xbf16>, vector<32x128xf32> -> vector<32x128xf32>
    %7 = arith.addf %3, %6 : vector<32x128xf32>
    %c0_6 = arith.constant 0 : index
    %c0_7 = arith.constant 0 : index
    %8 = vector.load %arg7[%c0_6, %c0_7] : memref<32x128xf32, #tpu.memory_space<vmem>>, vector<32x128xf32>
    tpu.vector_store %arg7[%c0_6, %c0_7], %7 {strides = array<i32>} : memref<32x128xf32, #tpu.memory_space<vmem>>, vector<32x128xf32>,
    %c0_i32_8 = arith.constant 0 : i32
    %9 = arith.cmpi eq, %arg1, %c0_i32_8 : i32
    %10 = arith.extui %9 : i1 to i32
    %c0_i32_9 = arith.constant 0 : i32
    %11 = arith.cmpi ne, %10, %c0_i32_9 : i32
    scf.if %11 {
      %c0_10 = arith.constant 0 : index
      %c0_11 = arith.constant 0 : index
      %12 = vector.load %arg7[%c0_10, %c0_11] : memref<32x128xf32, #tpu.memory_space<vmem>>, vector<32x128xf32>
      %13 = arith.truncf %12 : vector<32x128xf32> to vector<32x128xbf16>
      %c0_12 = arith.constant 0 : index
      %c0_13 = arith.constant 0 : index
      %14 = vector.load %arg4[%c0_12, %c0_13] : memref<128x128xbf16, #tpu.memory_space<vmem>>, vector<128x128xbf16>
      %cst_14 = arith.constant dense<0.000000e+00> : vector<32x128xf32>
      %15 = tpu.matmul %13, %14, %cst_14 {dimension_numbers = #tpu.dot_dimension_numbers<[1], [0], [0], [1], [0, 0, 1, 1], [], []>} : vector<32x128xbf16>, vector<128x128xbf16>, vector<32x128xf32> -> vector<32x128xf32>
      %c0_15 = arith.constant 0 : index
      %c0_16 = arith.constant 0 : index
      %16 = vector.load %arg5[%c0_15, %c0_16] : memref<1x128xf32, #tpu.memory_space<vmem>>, vector<1x128xf32>
      %17 = vector.broadcast %16 : vector<1x128xf32> to vector<32x128xf32>
      %18 = arith.addf %15, %17 : vector<32x128xf32>
      %cst_17 = arith.constant 0.000000e+00 : f32
      %19 = vector.broadcast %cst_17 : f32 to vector<32x128xf32>
      %20 = arith.maximumf %18, %19 : vector<32x128xf32>
      %c0_18 = arith.constant 0 : index
      %c0_19 = arith.constant 0 : index
      %21 = vector.load %arg6[%c0_18, %c0_19] : memref<32x128xf32, #tpu.memory_space<vmem>>, vector<32x128xf32>
      tpu.vector_store %arg6[%c0_18, %c0_19], %20 {strides = array<i32>} : memref<32x128xf32, #tpu.memory_space<vmem>>, vector<32x128xf32>,
    } else {
    }
    return
  }
  func.func @transform_0(%arg0: i32, %arg1: i32) -> (i32, i32) {
    %c0_i32 = arith.constant 0 : i32
    return %arg0, %arg1 : i32, i32
  }
  func.func @transform_1(%arg0: i32, %arg1: i32) -> (i32, i32) {
    %c0_i32 = arith.constant 0 : i32
    %c0_i32_0 = arith.constant 0 : i32
    return %arg1, %c0_i32 : i32, i32
  }
  func.func @transform_2(%arg0: i32, %arg1: i32) -> (i32, i32) {
    %c0_i32 = arith.constant 0 : i32
    %c0_i32_0 = arith.constant 0 : i32
    %c0_i32_1 = arith.constant 0 : i32
    return %c0_i32, %c0_i32_0 : i32, i32
  }
  func.func @transform_3(%arg0: i32, %arg1: i32) -> (i32, i32) {
    %c0_i32 = arith.constant 0 : i32
    %c0_i32_0 = arith.constant 0 : i32
    %c0_i32_1 = arith.constant 0 : i32
    return %c0_i32, %c0_i32_0 : i32, i32
  }
  func.func @transform_4(%arg0: i32, %arg1: i32) -> (i32, i32) {
    %c0_i32 = arith.constant 0 : i32
    %c0_i32_0 = arith.constant 0 : i32
    return %arg0, %c0_i32 : i32, i32
  }
}

</mosaic_0001>

<bundles_post_ra>
// kernel: tpu_custom_call.1
= control target key start
LH: loop header
LB: loop body
LE: loop exit
PB: predicated region body
PF: predicated region fallthrough
CT: control target
= control target key end

     0   :  { %9 = vsyncpa [#allocation4], 0  ;;  %s573_s0 = inlined_call_operand.hbm [shape: bf16[32,128], index: 0, kind: input, shape index: {}]   ;;  %s574_s1 = inlined_call_operand.hbm [shape: bf16[128,128], index: 1, kind: input, shape index: {}]   ;;  %s575_s2 = inlined_call_operand.hbm [shape: bf16[128,128], index: 2, kind: input, shape index: {}]   ;;  %s576_s3 = inlined_call_operand.vmem [shape: f32[1,128], index: 3, kind: input, shape index: {}]   ;;  %s577_s4 = inlined_call_operand.hbm [shape: f32[32,128], index: 4, kind: output, shape index: {}]  }
   0x1   :  { %10 = vsyncpa [#allocation7], 0 }
   0x2   :  { %11 = vsyncpa [#allocation5], 0  ;;  %s29_s17 = sshll.u32 %s574_s1, 4  ;;  %s525_s18 = smov [#allocation6]   ;;  %s30_s17 = int_to_ptr.hbm [resolvable:$true] %s29_s17 }
   0x3   :  { %s31_s19 = sshll.u32 %s525_s18, 4  ;;  %s16_s22 = sshll.u32 %s573_s0, 4  ;;  %s32_s19 = int_to_ptr.vmem [resolvable:$true] %s31_s19  ;;  %s17_s22 = int_to_ptr.hbm [resolvable:$true] %s16_s22 }
   0x4   :  { %s526_s23 = smov 64   ;;  %s527_s24 = smov 4  }
   0x5   :  { %37 = dma.hbm_to_vmem [thread:$0]  %s30_s17, 1024, %s32_s19, [#allocation7], %s526_s23, %s526_s23, %s527_s24  }
   0x6   :  { %s528_s25 = smov [#allocation3]   ;;  %s42_s29 = sshll.u32 %s575_s2, 4  ;;  %s43_s29 = int_to_ptr.hbm [resolvable:$true] %s42_s29 }
   0x7   :  { %s18_s26 = sshll.u32 %s528_s25, 4  ;;  %s529_s1 = smov [#allocation8]   ;;  %s19_s26 = int_to_ptr.vmem [resolvable:$true] %s18_s26 }
   0x8   :  { %24 = dma.hbm_to_vmem [thread:$0]  %s17_s22, 256, %s19_s26, [#allocation4], %s526_s23, %s526_s23, %s527_s24  }
   0x9   :  { %s44_s30 = sshll.u32 %s529_s1, 4  ;;  %s45_s30 = int_to_ptr.vmem [resolvable:$true] %s44_s30 }
   0xa   :  { %50 = dma.hbm_to_vmem [thread:$0]  %s43_s29, 1024, %s45_s30, [#allocation7], %s526_s23, %s526_s23, %s527_s24  }
   0xb   :  { %519 = dma.done.wait [#allocation4], 256  }
   0xc   :  { %520 = vsyncadd [#allocation4], 4294967040 }
   0xd   :  { %521 = dma.done.wait [#allocation7], 2048  }
   0xe   :  { %522 = vsyncadd [#allocation7], 4294965248  ;;  %v389_v0 = vld [vmem:[#allocation6 + $0x38] sm:$0xff]  ;;  %v388_v1 = vld [vmem:[#allocation6 + $0x30] sm:$0xff]  ;;  %s530_s5 = smov [#allocation9]   ;;  %s294_s9 = sshll.u32 %s577_s4, 4  ;;  %s295_s9 = int_to_ptr.hbm [resolvable:$true] %s294_s9 }
   0xf   :  { %157 = vmatpush.bf16.msra.mxu0 %v389_v0  ;;  %398 = vmatpush.bf16.msra.mxu2 %v389_v0  ;;  %v397_v2 = vld [vmem:[#allocation8 + $0x38] sm:$0xff]  ;;  %v396_v3 = vld [vmem:[#allocation8 + $0x30] sm:$0xff]  ;;  %v387_v4 = vld [vmem:[#allocation6 + $0x28] sm:$0xff]  ;;  %s292_s6 = sshll.u32 %s530_s5, 4  ;;  %s532_s10 = smov 8   ;;  %s293_s6 = int_to_ptr.vmem [resolvable:$true] %s292_s6 }
  0x10   :  { %261 = vmatpush.bf16.msra.mxu1 %v397_v2  ;;  %406 = vmatpush.bf16.msra.mxu3 %v397_v2  ;;  %v395_v5 = vld [vmem:[#allocation8 + $0x28] sm:$0xff]  ;;  %v386_v6 = vld [vmem:[#allocation6 + $0x20] sm:$0xff]  ;;  %v385_v8 = vld [vmem:[#allocation6 + $0x18] sm:$0xff] }
  0x11   :  { %v394_v7 = vld [vmem:[#allocation8 + $0x20] sm:$0xff]  ;;  %v393_v9 = vld [vmem:[#allocation8 + $0x18] sm:$0xff]  ;;  %v384_v10 = vld [vmem:[#allocation6 + $0x10] sm:$0xff] }
  0x12   :  { %v383_v11 = vld [vmem:[#allocation6 + $0x8] sm:$0xff]  ;;  %v382_v12 = vld [vmem:[#allocation6] sm:$0xff]  ;;  %v380_v13 = vld [vmem:[#allocation3] sm:$0xff] }
  0x13   :  { %158 = vmatpush.bf16.msra.mxu0 %v388_v1  ;;  %399 = vmatpush.bf16.msra.mxu2 %v388_v1  ;;  %v381_v14 = vld [vmem:[#allocation3 + $0x8] sm:$0xff]  ;;  %v392_v15 = vld [vmem:[#allocation8 + $0x10] sm:$0xff]  ;;  %v391_v16 = vld [vmem:[#allocation8 + $0x8] sm:$0xff] }
  0x14   :  { %262 = vmatpush.bf16.msra.mxu1 %v396_v3  ;;  %407 = vmatpush.bf16.msra.mxu3 %v396_v3  ;;  %v390_v17 = vld [vmem:[#allocation8] sm:$0xff]  ;;  %v422_v24 = vld [vmem:[%s576_s3] ss:$0 sm:$0xff]  ;;  %s531_s3 = smov 128  }
  0x17   :  { %159 = vmatpush.bf16.msra.mxu0 %v387_v4  ;;  %400 = vmatpush.bf16.msra.mxu2 %v387_v4 }
  0x18   :  { %263 = vmatpush.bf16.msra.mxu1 %v395_v5  ;;  %408 = vmatpush.bf16.msra.mxu3 %v395_v5 }
  0x1b   :  { %160 = vmatpush.bf16.msra.mxu0 %v386_v6  ;;  %401 = vmatpush.bf16.msra.mxu2 %v386_v6 }
  0x1c   :  { %264 = vmatpush.bf16.msra.mxu1 %v394_v7  ;;  %409 = vmatpush.bf16.msra.mxu3 %v394_v7 }
  0x1f   :  { %161 = vmatpush.bf16.msra.mxu0 %v385_v8  ;;  %402 = vmatpush.bf16.msra.mxu2 %v385_v8 }
  0x20   :  { %265 = vmatpush.bf16.msra.mxu1 %v393_v9  ;;  %410 = vmatpush.bf16.msra.mxu3 %v393_v9 }
  0x23   :  { %162 = vmatpush.bf16.msra.mxu0 %v384_v10  ;;  %403 = vmatpush.bf16.msra.mxu2 %v384_v10 }
  0x24   :  { %266 = vmatpush.bf16.msra.mxu1 %v392_v15  ;;  %411 = vmatpush.bf16.msra.mxu3 %v392_v15 }
  0x27   :  { %163 = vmatpush.bf16.msra.mxu0 %v383_v11  ;;  %404 = vmatpush.bf16.msra.mxu2 %v383_v11 }
  0x28   :  { %267 = vmatpush.bf16.msra.mxu1 %v391_v16  ;;  %412 = vmatpush.bf16.msra.mxu3 %v391_v16 }
  0x2b   :  { %164 = vmatpush.bf16.msra.mxu0 %v382_v12  ;;  %405 = vmatpush.bf16.msra.mxu2 %v382_v12 }
  0x2c   :  { %268 = vmatpush.bf16.msra.mxu1 %v390_v17  ;;  %413 = vmatpush.bf16.msra.mxu3 %v390_v17 }
  0x2e   :  { %165 = vmatmul.bf16.vlgmr.msra.gmra.mxu0 %v380_v13  ;;  %170 = vmatmul.bf16.vlgmr.msra.gmra.mxu2 %v381_v14 }
  0xab   :  { %v166_v18 = vpop.f32.mrf.mxu0 }
  0xb1   :  { %v171_v19 = vpop.f32.mrf.mxu2 }
  0xb3   :  { %v168_v20 = vpop.f32.mrf.mxu0 }
  0xb4   :  { %v191_v21 = vpack.c.bf16 %v168_v20, %v166_v18 }
  0xb6   :  { %269 = vmatmul.bf16.vlgmr.msra.gmra.mxu1 %v191_v21 }
  0xb9   :  { %v173_v22 = vpop.f32.mrf.mxu2 }
  0xba   :  { %v192_v23 = vpack.c.bf16 %v173_v22, %v171_v19 }
  0xbc   :  { %274 = vmatmul.bf16.vlgmr.msra.gmra.mxu3 %v192_v23 }
 0x133   :  { %v270_v25 = vpop.f32.mrf.mxu1 }
 0x134   :  { %v271_v26 = vadd.f32 %v422_v24, %v270_v25 }
 0x136   :  { %v280_v27 = vmax.f32 %v271_v26, 0.0 }
 0x138   :  { %284 = vst [vmem:[#allocation9] sm:$0xff] %v280_v27 }
 0x13b   :  { %v272_v28 = vpop.f32.mrf.mxu1 }
 0x13c   :  { %v273_v29 = vadd.f32 %v422_v24, %v272_v28 }
 0x13e   :  { %v281_v30 = vmax.f32 %v273_v29, 0.0 }
 0x13f   :  { %v275_v31 = vpop.f32.mrf.mxu3 }
 0x140   :  { %285 = vst [vmem:[#allocation9 + $0x8] sm:$0xff] %v281_v30  ;;  %v276_v32 = vadd.f32 %v422_v24, %v275_v31 }
 0x142   :  { %v282_v33 = vmax.f32 %v276_v32, 0.0 }
 0x144   :  { %286 = vst [vmem:[#allocation9 + $0x10] sm:$0xff] %v282_v33 }
 0x147   :  { %v277_v34 = vpop.f32.mrf.mxu3 }
 0x148   :  { %v278_v35 = vadd.f32 %v422_v24, %v277_v34 }
 0x14a   :  { %v283_v36 = vmax.f32 %v278_v35, 0.0 }
 0x14c   :  { %287 = vst [vmem:[#allocation9 + $0x18] sm:$0xff] %v283_v36 }
 0x14d   :  { %300 = dma.vmem_to_hbm [thread:$0]  %s293_s6, 512, %s295_s9, [#allocation5], %s531_s3, %s531_s3, %s532_s10  }
 0x14e   :  { %523 = dma.done.wait [#allocation5], 512  }
 0x14f   :  { %524 = vsyncadd [#allocation5], 4294966784 }
 0x150   :  { %305 = vsyncpa [#allocation4], 1 }
 0x151   :  { %306 = vsyncpa [#allocation7], 1 }
 0x152   :  { %307 = vsyncpa [#allocation5], 1 }

</bundles_post_ra>
